<compile_context>
chip_gen: v6e
topology: v6e:2x2x1
jax: 0.10.0
libtpu: 0.0.40
codegen_flags: <defaults>
</compile_context>

<pallas_src>
import jax
import jax.numpy as jnp
from jax.experimental import pallas as pl
from jax.experimental.pallas import tpu as pltpu

IN_F = 544
H1 = 256
H2 = 64        # logical hidden-2 width (no lane padding needed)
OUT_F = 2      # logical output width
OUT_PAD = 8    # small padded output width (full-dim last axis -> legal block)
DEFAULT_TILE_B = 2048  # ~14 MiB VMEM footprint; well under 64 MiB on v7x


def _round_up(n, m):
    return ((n + m - 1) // m) * m


def _mlp_kernel(x_ref, w1_ref, b1_ref, w2_ref, b2_ref, w3_ref, b3_ref, out_ref):
    # Cast activations to bf16 in-kernel (VPU has slack; avoids an extra XLA
    # pass + HBM round-trip over x in the wrapper).
    x = x_ref[...].astype(jnp.bfloat16)
    # Layer 1: bf16 x bf16 MXU matmul, f32 accumulate, f32 bias + ReLU.
    h1 = jnp.dot(x, w1_ref[...], preferred_element_type=jnp.float32)
    h1 = jnp.maximum(h1 + b1_ref[...], 0.0)
    # Layer 2 (256 -> 64).
    h2 = jnp.dot(h1.astype(jnp.bfloat16), w2_ref[...],
                 preferred_element_type=jnp.float32)
    h2 = jnp.maximum(h2 + b2_ref[...], 0.0)
    # Layer 3 (64 -> 8 padded; logical 2 columns, rest zero).
    out = jnp.dot(h2.astype(jnp.bfloat16), w3_ref[...],
                  preferred_element_type=jnp.float32)
    out_ref[...] = (out + b3_ref[...]).astype(out_ref.dtype)


def fusion_classifier_forward(x, params, *, tile_b=DEFAULT_TILE_B):
    """x: (B, 544) float32.  params: output of prepare_params()."""
    B, fin = x.shape
    assert fin == IN_F, fin
    w1, b1 = params["w1"], params["b1"]
    w2, b2 = params["w2"], params["b2"]
    w3, b3 = params["w3"], params["b3"]

    # Batch tile: multiple of 16, clamped to the (rounded-up) batch.
    tile_b = max(16, min(int(tile_b), _round_up(B, 16)))
    # v7x has 2 TensorCores: make sure the "parallel" grid axis has >= 2 steps
    # for any batch big enough to be worth splitting (no effect on v5e/v6e).
    if B > 32:
        tile_b = min(tile_b, _round_up(pl.cdiv(B, 2), 16))
    tile_b = _round_up(tile_b, 16)
    n_steps = pl.cdiv(B, tile_b)

    # Advisory cost for XLA scheduling around the custom call.
    mm_terms = IN_F * H1 + H1 * H2 + H2 * OUT_PAD
    flops = 2 * B * mm_terms
    bytes_accessed = (B * IN_F * 4           # f32 activations in
                      + B * OUT_PAD * 4      # f32 padded logits out
                      + mm_terms * 2         # bf16 weights
                      + (H1 + H2 + OUT_PAD) * 4)

    # VMEM budget: double-buffered x/out tiles, resident weights (2 bufs),
    # plus live f32/bf16 intermediates for one tile.
    per_row_live = IN_F * 2 + H1 * 4 + H1 * 2 + H2 * 4 + H2 * 2 + OUT_PAD * 4
    vmem_bytes = (2 * tile_b * IN_F * 4
                  + 2 * tile_b * OUT_PAD * 4
                  + 2 * (mm_terms * 2 + (H1 + H2 + OUT_PAD) * 4)
                  + tile_b * per_row_live)
    # Cap below v7x's 64 MiB physical VMEM (harmless on v5e/v6e).
    vmem_limit = int(min(2 * vmem_bytes + (4 << 20), 56 << 20))

    def resident(shape):
        # Weights/biases: same block every step -> DMA'd once, VMEM-resident.
        return pl.BlockSpec(shape, lambda i: (0,) * len(shape))

    # TODO(synk): single-buffering (pl.Buffered(1)) on the resident weight
    # specs would shave a little VMEM; skipped to keep lowering conservative.
    out_padded = pl.pallas_call(
        _mlp_kernel,
        out_shape=jax.ShapeDtypeStruct((B, OUT_PAD), jnp.float32),
        grid=(n_steps,),
        in_specs=[
            pl.BlockSpec((tile_b, IN_F), lambda i: (i, 0)),
            resident(w1.shape), resident(b1.shape),
            resident(w2.shape), resident(b2.shape),
            resident(w3.shape), resident(b3.shape),
        ],
        out_specs=pl.BlockSpec((tile_b, OUT_PAD), lambda i: (i, 0)),
        compiler_params=pltpu.CompilerParams(
            dimension_semantics=("parallel",),
            vmem_limit_bytes=vmem_limit),
        cost_estimate=pl.CostEstimate(
            flops=int(flops),
            transcendentals=0,
            bytes_accessed=int(bytes_accessed)),
    )(x, w1, b1, w2, b2, w3, b3)

    # Overhanging rows of the last grid block (if any) are never written /
    # are garbage -> slicing to [:B, :OUT_F] is mandatory, not cosmetic.
    return out_padded[:, :OUT_F]


def init_params(key):
    """PyTorch-like init; weights stored as (in, out) so kernel does x @ W + b."""
    dims = [(IN_F, H1), (H1, H2), (H2, OUT_F)]
    params = {}
    for i, (fi, fo) in enumerate(dims, start=1):
        key, kw, kb = jax.random.split(key, 3)
        bound = 1.0 / (fi ** 0.5)
        params[f"w{i}"] = jax.random.uniform(
            kw, (fi, fo), jnp.float32, minval=-bound, maxval=bound)
        params[f"b{i}"] = jax.random.uniform(
            kb, (1, fo), jnp.float32, minval=-bound, maxval=bound)
    return params


def prepare_params(raw):
    """One-time bf16 cast of matmul operands + output padding 2 -> 8 lanes.

    Zero padding of w3/b3 columns is numerically inert: padded logits columns
    are sliced off in the wrapper.
    """
    w1 = raw["w1"].astype(jnp.bfloat16)                                 # (544,256)
    b1 = raw["b1"].astype(jnp.float32)                                  # (1,256)
    w2 = raw["w2"].astype(jnp.bfloat16)                                 # (256,64)
    b2 = raw["b2"].astype(jnp.float32)                                  # (1,64)
    w3 = jnp.zeros((H2, OUT_PAD), jnp.bfloat16).at[:, :OUT_F].set(
        raw["w3"].astype(jnp.bfloat16))                                 # (64,8)
    b3 = jnp.zeros((1, OUT_PAD), jnp.float32).at[:, :OUT_F].set(raw["b3"])
    return {"w1": w1, "b1": b1, "w2": w2, "b2": b2, "w3": w3, "b3": b3}


def reference_forward(x, pp):
    """Pure-JAX reference that mimics the kernel's bf16-in / f32-acc numerics."""
    xf = x.astype(jnp.bfloat16).astype(jnp.float32)
    w1 = pp["w1"].astype(jnp.float32)
    w2 = pp["w2"].astype(jnp.float32)
    w3 = pp["w3"].astype(jnp.float32)
    h1 = jnp.maximum(xf @ w1 + pp["b1"], 0.0)
    h1 = h1.astype(jnp.bfloat16).astype(jnp.float32)
    h2 = jnp.maximum(h1 @ w2 + pp["b2"], 0.0)
    h2 = h2.astype(jnp.bfloat16).astype(jnp.float32)
    out = h2 @ w3 + pp["b3"]
    return out[:, :OUT_F]


if __name__ == "__main__":
    key = jax.random.PRNGKey(0)
    key, kx = jax.random.split(key)
    B = 32
    x = jax.random.normal(kx, (B, IN_F), jnp.float32)

    params = prepare_params(init_params(key))

    out = jax.block_until_ready(fusion_classifier_forward(x, params))
    ref = reference_forward(x, params)
    assert out.shape == (B, OUT_F), out.shape
    assert jnp.allclose(out, ref, atol=5e-3, rtol=5e-3), (
        "mismatch vs JAX reference, max abs diff = %f"
        % float(jnp.max(jnp.abs(out - ref))))

    # Exercise the multi-step grid + partial-last-block path (18 rows, 16/tile).
    out2 = jax.block_until_ready(
        fusion_classifier_forward(x[:18], params, tile_b=16))
    assert out2.shape == (18, OUT_F), out2.shape
    assert jnp.allclose(out2, ref[:18], atol=5e-3, rtol=5e-3), "tiled-path mismatch"

    print("KERNEL_OK")
</pallas_src>

<mosaic_0001>
module attributes {stable_mosaic.version = 11 : i64} {
  func.func @_mlp_kernel(%arg0: i32, %arg1: memref<32x544xf32, #tpu.memory_space<vmem>>, %arg2: memref<544x256xbf16, #tpu.memory_space<vmem>>, %arg3: memref<1x256xf32, #tpu.memory_space<vmem>>, %arg4: memref<256x64xbf16, #tpu.memory_space<vmem>>, %arg5: memref<1x64xf32, #tpu.memory_space<vmem>>, %arg6: memref<64x8xbf16, #tpu.memory_space<vmem>>, %arg7: memref<1x8xf32, #tpu.memory_space<vmem>>, %arg8: memref<32x8xf32, #tpu.memory_space<vmem>>) attributes {dimension_semantics = [#tpu.dimension_semantics<parallel>], iteration_bounds = array<i64: 1>, scalar_prefetch = 0 : i64, scratch_operands = 0 : i64, tpu.core_type = #tpu.core_type<tc>, window_params = [{transform_indices = @transform_0, window_bounds = array<i64: 32, 544>}, {pipeline_mode = #tpu.pipeline_mode<synchronous>, transform_indices = @transform_1, window_bounds = array<i64: 544, 256>}, {pipeline_mode = #tpu.pipeline_mode<synchronous>, transform_indices = @transform_2, window_bounds = array<i64: 1, 256>}, {pipeline_mode = #tpu.pipeline_mode<synchronous>, transform_indices = @transform_3, window_bounds = array<i64: 256, 64>}, {pipeline_mode = #tpu.pipeline_mode<synchronous>, transform_indices = @transform_4, window_bounds = array<i64: 1, 64>}, {pipeline_mode = #tpu.pipeline_mode<synchronous>, transform_indices = @transform_5, window_bounds = array<i64: 64, 8>}, {pipeline_mode = #tpu.pipeline_mode<synchronous>, transform_indices = @transform_6, window_bounds = array<i64: 1, 8>}, {transform_indices = @transform_7, window_bounds = array<i64: 32, 8>}]} {
    %c0 = arith.constant 0 : index
    %c0_0 = arith.constant 0 : index
    %0 = vector.load %arg1[%c0, %c0_0] : memref<32x544xf32, #tpu.memory_space<vmem>>, vector<32x544xf32>
    %1 = arith.truncf %0 : vector<32x544xf32> to vector<32x544xbf16>
    %c0_1 = arith.constant 0 : index
    %c0_2 = arith.constant 0 : index
    %2 = vector.load %arg2[%c0_1, %c0_2] : memref<544x256xbf16, #tpu.memory_space<vmem>>, vector<544x256xbf16>
    %cst = arith.constant dense<0.000000e+00> : vector<32x256xf32>
    %3 = tpu.matmul %1, %2, %cst {dimension_numbers = #tpu.dot_dimension_numbers<[1], [0], [0], [1], [0, 0, 1, 1], [], []>} : vector<32x544xbf16>, vector<544x256xbf16>, vector<32x256xf32> -> vector<32x256xf32>
    %c0_3 = arith.constant 0 : index
    %c0_4 = arith.constant 0 : index
    %4 = vector.load %arg3[%c0_3, %c0_4] : memref<1x256xf32, #tpu.memory_space<vmem>>, vector<1x256xf32>
    %5 = vector.broadcast %4 : vector<1x256xf32> to vector<32x256xf32>
    %6 = arith.addf %3, %5 : vector<32x256xf32>
    %cst_5 = arith.constant 0.000000e+00 : f32
    %7 = vector.broadcast %cst_5 : f32 to vector<32x256xf32>
    %8 = arith.maximumf %6, %7 : vector<32x256xf32>
    %9 = arith.truncf %8 : vector<32x256xf32> to vector<32x256xbf16>
    %c0_6 = arith.constant 0 : index
    %c0_7 = arith.constant 0 : index
    %10 = vector.load %arg4[%c0_6, %c0_7] : memref<256x64xbf16, #tpu.memory_space<vmem>>, vector<256x64xbf16>
    %cst_8 = arith.constant dense<0.000000e+00> : vector<32x64xf32>
    %11 = tpu.matmul %9, %10, %cst_8 {dimension_numbers = #tpu.dot_dimension_numbers<[1], [0], [0], [1], [0, 0, 1, 1], [], []>} : vector<32x256xbf16>, vector<256x64xbf16>, vector<32x64xf32> -> vector<32x64xf32>
    %c0_9 = arith.constant 0 : index
    %c0_10 = arith.constant 0 : index
    %12 = vector.load %arg5[%c0_9, %c0_10] : memref<1x64xf32, #tpu.memory_space<vmem>>, vector<1x64xf32>
    %13 = vector.broadcast %12 : vector<1x64xf32> to vector<32x64xf32>
    %14 = arith.addf %11, %13 : vector<32x64xf32>
    %cst_11 = arith.constant 0.000000e+00 : f32
    %15 = vector.broadcast %cst_11 : f32 to vector<32x64xf32>
    %16 = arith.maximumf %14, %15 : vector<32x64xf32>
    %17 = arith.truncf %16 : vector<32x64xf32> to vector<32x64xbf16>
    %c0_12 = arith.constant 0 : index
    %c0_13 = arith.constant 0 : index
    %18 = vector.load %arg6[%c0_12, %c0_13] : memref<64x8xbf16, #tpu.memory_space<vmem>>, vector<64x8xbf16>
    %cst_14 = arith.constant dense<0.000000e+00> : vector<32x8xf32>
    %19 = tpu.matmul %17, %18, %cst_14 {dimension_numbers = #tpu.dot_dimension_numbers<[1], [0], [0], [1], [0, 0, 1, 1], [], []>} : vector<32x64xbf16>, vector<64x8xbf16>, vector<32x8xf32> -> vector<32x8xf32>
    %c0_15 = arith.constant 0 : index
    %c0_16 = arith.constant 0 : index
    %20 = vector.load %arg7[%c0_15, %c0_16] : memref<1x8xf32, #tpu.memory_space<vmem>>, vector<1x8xf32>
    %21 = vector.broadcast %20 : vector<1x8xf32> to vector<32x8xf32>
    %22 = arith.addf %19, %21 : vector<32x8xf32>
    %c0_17 = arith.constant 0 : index
    %c0_18 = arith.constant 0 : index
    %23 = vector.load %arg8[%c0_17, %c0_18] : memref<32x8xf32, #tpu.memory_space<vmem>>, vector<32x8xf32>
    tpu.vector_store %arg8[%c0_17, %c0_18], %22 {strides = array<i32>} : memref<32x8xf32, #tpu.memory_space<vmem>>, vector<32x8xf32>,
    return
  }
  func.func @transform_0(%arg0: i32) -> (i32, i32) {
    %c0_i32 = arith.constant 0 : i32
    %c0_i32_0 = arith.constant 0 : i32
    return %arg0, %c0_i32 : i32, i32
  }
  func.func @transform_1(%arg0: i32) -> (i32, i32) {
    %c0_i32 = arith.constant 0 : i32
    %c0_i32_0 = arith.constant 0 : i32
    %c0_i32_1 = arith.constant 0 : i32
    return %c0_i32, %c0_i32_0 : i32, i32
  }
  func.func @transform_2(%arg0: i32) -> (i32, i32) {
    %c0_i32 = arith.constant 0 : i32
    %c0_i32_0 = arith.constant 0 : i32
    %c0_i32_1 = arith.constant 0 : i32
    return %c0_i32, %c0_i32_0 : i32, i32
  }
  func.func @transform_3(%arg0: i32) -> (i32, i32) {
    %c0_i32 = arith.constant 0 : i32
    %c0_i32_0 = arith.constant 0 : i32
    %c0_i32_1 = arith.constant 0 : i32
    return %c0_i32, %c0_i32_0 : i32, i32
  }
  func.func @transform_4(%arg0: i32) -> (i32, i32) {
    %c0_i32 = arith.constant 0 : i32
    %c0_i32_0 = arith.constant 0 : i32
    %c0_i32_1 = arith.constant 0 : i32
    return %c0_i32, %c0_i32_0 : i32, i32
  }
  func.func @transform_5(%arg0: i32) -> (i32, i32) {
    %c0_i32 = arith.constant 0 : i32
    %c0_i32_0 = arith.constant 0 : i32
    %c0_i32_1 = arith.constant 0 : i32
    return %c0_i32, %c0_i32_0 : i32, i32
  }
  func.func @transform_6(%arg0: i32) -> (i32, i32) {
    %c0_i32 = arith.constant 0 : i32
    %c0_i32_0 = arith.constant 0 : i32
    %c0_i32_1 = arith.constant 0 : i32
    return %c0_i32, %c0_i32_0 : i32, i32
  }
  func.func @transform_7(%arg0: i32) -> (i32, i32) {
    %c0_i32 = arith.constant 0 : i32
    %c0_i32_0 = arith.constant 0 : i32
    return %arg0, %c0_i32 : i32, i32
  }
}

</mosaic_0001>

<bundles_post_ra>
// kernel: tpu_custom_call.1
= control target key start
LH: loop header
LB: loop body
LE: loop exit
PB: predicated region body
PF: predicated region fallthrough
CT: control target
= control target key end

     0   :  { %12 = vsyncpa [#allocation3], 0  ;;  %s1252_s24 = smov [#allocation2]   ;;  %s1440_s0 = inlined_call_operand.vmem [shape: f32[32,544], index: 0, kind: input, shape index: {}]   ;;  %s1441_s1 = inlined_call_operand.hbm [shape: bf16[544,256], index: 1, kind: input, shape index: {}]   ;;  %s1442_s2 = inlined_call_operand.vmem [shape: f32[1,256], index: 2, kind: input, shape index: {}]   ;;  %s1443_s3 = inlined_call_operand.vmem [shape: bf16[256,64], index: 3, kind: input, shape index: {}]   ;;  %s1444_s4 = inlined_call_operand.vmem [shape: f32[1,64], index: 4, kind: input, shape index: {}]   ;;  %s1445_s5 = inlined_call_operand.vmem [shape: bf16[64,8], index: 5, kind: input, shape index: {}]   ;;  %s1446_s6 = inlined_call_operand.vmem [shape: f32[1,8], index: 6, kind: input, shape index: {}]   ;;  %s1447_s7 = inlined_call_operand.vmem [shape: f32[32,8], index: 7, kind: output, shape index: {}]  }
   0x1   :  { %s20_s25 = sshll.u32 %s1252_s24, 4  ;;  %s21_s25 = int_to_ptr.vmem [resolvable:$true] %s20_s25 }
   0x2   :  { %s1238_s26 = scalar_lea.vmem %s21_s25, 8704  ;;  %p1243_p1 = scmp.lt.s32.totalorder %s21_s25, %s21_s25 }
   0x3   :  { %p1239_p0 = scmp.ne.s32.totalorder %s21_s25, %s1238_s26  ;;  %p1244_p2 = scmp.lt.s32.totalorder %s1238_s26, %s1238_s26 }
   0x5   :  { %p1245_p3 = por %p1244_p2, %p1243_p1 }
   0x7   :  { %p1246_p4 = pnand %p1245_p3, %p1239_p0 }
   0x9   :  { %1249 = shalt.err (!%p1246_p4)
}
   0xa   :  { %s1253_s27 = smov 128   ;;  %s1254_s28 = smov 8  }
   0xb   :  { %26 = dma.hbm_to_vmem [thread:$0]  %s1441_s1, 8704, %s21_s25, [#allocation3], %s1253_s27, %s1253_s27, %s1254_s28  }
   0xc   :  { %1250 = dma.done.wait [#allocation3], 8704  }
   0xd   :  { %1251 = vsyncadd [#allocation3], 4294958592  ;;  %v1108_v0 = vld [vmem:[#allocation2 + $0x74] ss:$8 sps:$4 sm:$0xff]   ;;  %v1110_v1 = vld [vmem:[#allocation2 + $0x70] ss:$8 sps:$4 sm:$0xff]  }
   0xe   :  { %498 = vmatprep.subr.bf16.mxu0 %v1108_v0  ;;  %v1111_v2 = vld [vmem:[#allocation2 + $0x174] ss:$8 sps:$4 sm:$0xff]   ;;  %v1113_v3 = vld [vmem:[#allocation2 + $0x170] ss:$8 sps:$4 sm:$0xff]   ;;  %v1114_v4 = vld [vmem:[#allocation2 + $0x64] ss:$8 sps:$4 sm:$0xff]  }
   0xf   :  { %499 = vmatpush1.bf16.msra.mxu0 %v1110_v1  ;;  %v1116_v5 = vld [vmem:[#allocation2 + $0x60] ss:$8 sps:$4 sm:$0xff]   ;;  %551 = vmatprep.subr.bf16.mxu1 %v1111_v2  ;;  %v1117_v6 = vld [vmem:[#allocation2 + $0x164] ss:$8 sps:$4 sm:$0xff]   ;;  %v1120_v8 = vld [vmem:[#allocation2 + $0x54] ss:$8 sps:$4 sm:$0xff]  }
  0x10   :  { %552 = vmatpush1.bf16.msra.mxu1 %v1113_v3  ;;  %500 = vmatprep.subr.bf16.mxu0 %v1114_v4  ;;  %v1119_v7 = vld [vmem:[#allocation2 + $0x160] ss:$8 sps:$4 sm:$0xff]   ;;  %v1122_v9 = vld [vmem:[#allocation2 + $0x50] ss:$8 sps:$4 sm:$0xff]   ;;  %v1123_v10 = vld [vmem:[#allocation2 + $0x154] ss:$8 sps:$4 sm:$0xff]  }
  0x11   :  { %553 = vmatprep.subr.bf16.mxu1 %v1117_v6  ;;  %v1126_v11 = vld [vmem:[#allocation2 + $0x44] ss:$8 sps:$4 sm:$0xff]   ;;  %v1125_v12 = vld [vmem:[#allocation2 + $0x150] ss:$8 sps:$4 sm:$0xff]   ;;  %v1128_v14 = vld [vmem:[#allocation2 + $0x40] ss:$8 sps:$4 sm:$0xff]  }
  0x12   :  { %v1129_v13 = vld [vmem:[#allocation2 + $0x144] ss:$8 sps:$4 sm:$0xff]   ;;  %v1132_v15 = vld [vmem:[#allocation2 + $0x34] ss:$8 sps:$4 sm:$0xff]   ;;  %v1131_v16 = vld [vmem:[#allocation2 + $0x140] ss:$8 sps:$4 sm:$0xff]  }
  0x13   :  { %501 = vmatpush1.bf16.msra.mxu0 %v1116_v5  ;;  %v1135_v17 = vld [vmem:[#allocation2 + $0x134] ss:$8 sps:$4 sm:$0xff]   ;;  %v1134_v18 = vld [vmem:[#allocation2 + $0x30] ss:$8 sps:$4 sm:$0xff]   ;;  %v1138_v19 = vld [vmem:[#allocation2 + $0x24] ss:$8 sps:$4 sm:$0xff]  }
  0x14   :  { %502 = vmatprep.subr.bf16.mxu0 %v1120_v8  ;;  %554 = vmatpush1.bf16.msra.mxu1 %v1119_v7  ;;  %v1137_v20 = vld [vmem:[#allocation2 + $0x130] ss:$8 sps:$4 sm:$0xff]   ;;  %v1141_v21 = vld [vmem:[#allocation2 + $0x124] ss:$8 sps:$4 sm:$0xff]   ;;  %v1140_v22 = vld [vmem:[#allocation2 + $0x20] ss:$8 sps:$4 sm:$0xff]  }
  0x15   :  { %555 = vmatprep.subr.bf16.mxu1 %v1123_v10  ;;  %v1144_v23 = vld [vmem:[#allocation2 + $0x14] ss:$8 sps:$4 sm:$0xff]   ;;  %v1143_v24 = vld [vmem:[#allocation2 + $0x120] ss:$8 sps:$4 sm:$0xff]   ;;  %v1146_v26 = vld [vmem:[#allocation2 + $0x10] ss:$8 sps:$4 sm:$0xff]  }
  0x16   :  { %v1147_v25 = vld [vmem:[#allocation2 + $0x114] ss:$8 sps:$4 sm:$0xff]   ;;  %v1150_v27 = vld [vmem:[#allocation2 + $0x4] ss:$8 sps:$4 sm:$0xff]   ;;  %v1149_v28 = vld [vmem:[#allocation2 + $0x110] ss:$8 sps:$4 sm:$0xff]  }
  0x17   :  { %503 = vmatpush1.bf16.msra.mxu0 %v1122_v9  ;;  %v1153_v29 = vld [vmem:[#allocation2 + $0x104] ss:$8 sps:$4 sm:$0xff]   ;;  %v1152_v30 = vld [vmem:[#allocation2] ss:$8 sps:$4 sm:$0xff]   ;;  %v1156_v31 = vld [vmem:[#allocation2 + $0xf4] ss:$8 sps:$4 sm:$0xff]  }
  0x18   :  { %504 = vmatprep.subr.bf16.mxu0 %v1126_v11  ;;  %556 = vmatpush1.bf16.msra.mxu1 %v1125_v12  ;;  %v1155_v32 = vld [vmem:[#allocation2 + $0x100] ss:$8 sps:$4 sm:$0xff]   ;;  %v1159_v33 = vld [vmem:[#allocation2 + $0x1f4] ss:$8 sps:$4 sm:$0xff]   ;;  %v1158_v34 = vld [vmem:[#allocation2 + $0xf0] ss:$8 sps:$4 sm:$0xff]  }
  0x19   :  { %557 = vmatprep.subr.bf16.mxu1 %v1129_v13  ;;  %v1162_v35 = vld [vmem:[#allocation2 + $0xe4] ss:$8 sps:$4 sm:$0xff]   ;;  %v1161_v36 = vld [vmem:[#allocation2 + $0x1f0] ss:$8 sps:$4 sm:$0xff]   ;;  %v1164_v38 = vld [vmem:[#allocation2 + $0xe0] ss:$8 sps:$4 sm:$0xff]  }
  0x1a   :  { %v1165_v37 = vld [vmem:[#allocation2 + $0x1e4] ss:$8 sps:$4 sm:$0xff]   ;;  %v1168_v39 = vld [vmem:[#allocation2 + $0xd4] ss:$8 sps:$4 sm:$0xff]   ;;  %v1167_v40 = vld [vmem:[#allocation2 + $0x1e0] ss:$8 sps:$4 sm:$0xff]  }
  0x1b   :  { %505 = vmatpush1.bf16.msra.mxu0 %v1128_v14  ;;  %v1171_v41 = vld [vmem:[#allocation2 + $0x1d4] ss:$8 sps:$4 sm:$0xff]   ;;  %v1170_v42 = vld [vmem:[#allocation2 + $0xd0] ss:$8 sps:$4 sm:$0xff]   ;;  %v1174_v43 = vld [vmem:[#allocation2 + $0xc4] ss:$8 sps:$4 sm:$0xff]  }
  0x1c   :  { %506 = vmatprep.subr.bf16.mxu0 %v1132_v15  ;;  %558 = vmatpush1.bf16.msra.mxu1 %v1131_v16  ;;  %v1173_v44 = vld [vmem:[#allocation2 + $0x1d0] ss:$8 sps:$4 sm:$0xff]   ;;  %v1177_v45 = vld [vmem:[#allocation2 + $0x1c4] ss:$8 sps:$4 sm:$0xff]   ;;  %v1176_v48 = vld [vmem:[#allocation2 + $0xc0] ss:$8 sps:$4 sm:$0xff]  }
  0x1d   :  { %559 = vmatprep.subr.bf16.mxu1 %v1135_v17  ;;  %v42_v46 = vld [vmem:[%s1440_s0 + $0x8] sm:$0xff]  ;;  %v47_v47 = vld [vmem:[%s1440_s0 + $0x30] sm:$0xff]  ;;  %v44_v52 = vld [vmem:[%s1440_s0 + $0x18] sm:$0xff]  ;;  %vm491_vm0 = vcmask 261120   ;;  %vm898_vm1 = vcmask 523264   ;;  %vm954_vm2 = vcmask 64512  }
  0x1e   :  { %v62_v49 = vpack.c.bf16 %v47_v47, %v42_v46  ;;  %v1180_v50 = vld [vmem:[#allocation2 + $0xb4] ss:$8 sps:$4 sm:$0xff]   ;;  %v1179_v51 = vld [vmem:[#allocation2 + $0x1c0] ss:$8 sps:$4 sm:$0xff]   ;;  %v1182_v56 = vld [vmem:[#allocation2 + $0xb0] ss:$8 sps:$4 sm:$0xff]  }
  0x1f   :  { %507 = vmatpush1.bf16.msra.mxu0 %v1134_v18  ;;  %v49_v53 = vld [vmem:[%s1440_s0 + $0x40] sm:$0xff]  ;;  %v1183_v54 = vld [vmem:[#allocation2 + $0x1b4] ss:$8 sps:$4 sm:$0xff]   ;;  %v1185_v58 = vld [vmem:[#allocation2 + $0x1b0] ss:$8 sps:$4 sm:$0xff]  }
  0x20   :  { %508 = vmatprep.subr.bf16.mxu0 %v1138_v19  ;;  %560 = vmatpush1.bf16.msra.mxu1 %v1137_v20  ;;  %v64_v55 = vpack.c.bf16 %v49_v53, %v44_v52  ;;  %v1186_v57 = vld [vmem:[#allocation2 + $0xa4] ss:$8 sps:$4 sm:$0xff]   ;;  %v1188_v60 = vld [vmem:[#allocation2 + $0xa0] ss:$8 sps:$4 sm:$0xff]   ;;  %v1192_v62 = vld [vmem:[#allocation2 + $0x94] ss:$8 sps:$4 sm:$0xff]  }
  0x21   :  { %561 = vmatprep.subr.bf16.mxu1 %v1141_v21  ;;  %530 = vmatprep.mubr.bf16.mxu0 %v62_v49  ;;  %v1189_v59 = vld [vmem:[#allocation2 + $0x1a4] ss:$8 sps:$4 sm:$0xff]   ;;  %v1191_v61 = vld [vmem:[#allocation2 + $0x1a0] ss:$8 sps:$4 sm:$0xff]   ;;  %v1194_v63 = vld [vmem:[#allocation2 + $0x90] ss:$8 sps:$4 sm:$0xff]  }
  0x22   :  { %583 = vmatprep.mubr.bf16.mxu1 %v64_v55  ;;  %v1195_v0 = vld [vmem:[#allocation2 + $0x194] ss:$8 sps:$4 sm:$0xff]   ;;  %v1198_v1 = vld [vmem:[#allocation2 + $0x84] ss:$8 sps:$4 sm:$0xff]   ;;  %v1197_v2 = vld [vmem:[#allocation2 + $0x190] ss:$8 sps:$4 sm:$0xff]  }
  0x23   :  { %509 = vmatpush1.bf16.msra.mxu0 %v1140_v22  ;;  %v1201_v3 = vld [vmem:[#allocation2 + $0x184] ss:$8 sps:$4 sm:$0xff]   ;;  %v1200_v4 = vld [vmem:[#allocation2 + $0x80] ss:$8 sps:$4 sm:$0xff]   ;;  %v1206_v7 = vld [vmem:[#allocation2 + $0x214] ss:$8 sps:$4 sm:$0xff]  }
  0x24   :  { %510 = vmatprep.subr.bf16.mxu0 %v1144_v23  ;;  %562 = vmatpush1.bf16.msra.mxu1 %v1143_v24  ;;  %v41_v5 = vld [vmem:[%s1440_s0] sm:$0xff]  ;;  %v46_v6 = vld [vmem:[%s1440_s0 + $0x28] sm:$0xff]  ;;  %v52_v8 = vld [vmem:[%s1440_s0 + $0x58] sm:$0xff] }
  0x25   :  { %563 = vmatprep.subr.bf16.mxu1 %v1147_v25  ;;  %v57_v9 = vld [vmem:[%s1440_s0 + $0x80] sm:$0xff]  ;;  %v43_v11 = vld [vmem:[%s1440_s0 + $0x10] sm:$0xff]  ;;  %v48_v12 = vld [vmem:[%s1440_s0 + $0x38] sm:$0xff]  ;;  %v61_v17 = vpack.c.bf16 %v46_v6, %v41_v5 }
  0x26   :  { %v1203_v10 = vld [vmem:[#allocation2 + $0x180] ss:$8 sps:$4 sm:$0xff]   ;;  %v59_v14 = vld [vmem:[%s1440_s0 + $0x90] sm:$0xff]  ;;  %v1210_v15 = vld [vmem:[%s1443_s3 + $0x78] sm:$0xff]   ;;  %v67_v19 = vpack.c.bf16 %v57_v9, %v52_v8  ;;  %v63_v21 = vpack.c.bf16 %v48_v12, %v43_v11 }
  0x27   :  { %511 = vmatpush1.bf16.msra.mxu0 %v1146_v26  ;;  %v54_v13 = vld [vmem:[%s1440_s0 + $0x68] sm:$0xff]  ;;  %v1204_v16 = vld [vmem:[#allocation2 + $0x210] ss:$8 sps:$4 sm:$0xff]   ;;  %v53_v26 = vld [vmem:[%s1440_s0 + $0x60] sm:$0xff] }
  0x28   :  { %512 = vmatprep.subr.bf16.mxu0 %v1150_v27  ;;  %564 = vmatpush1.bf16.msra.mxu1 %v1149_v28  ;;  %v1209_v18 = vld [vmem:[#allocation2 + $0x204] ss:$8 sps:$4 sm:$0xff]   ;;  %v1211_v20 = vld [vmem:[%s1443_s3 + $0x38] sm:$0xff]   ;;  %v69_v22 = vpack.c.bf16 %v59_v14, %v54_v13  ;;  %v51_v23 = vld [vmem:[%s1440_s0 + $0x50] sm:$0xff] }
  0x29   :  { %565 = vmatprep.subr.bf16.mxu1 %v1153_v29  ;;  %v56_v24 = vld [vmem:[%s1440_s0 + $0x78] sm:$0xff]  ;;  %v1207_v25 = vld [vmem:[#allocation2 + $0x200] ss:$8 sps:$4 sm:$0xff]   ;;  %v1221_v46 = vld [vmem:[%s1443_s3 + $0x10] sm:$0xff]  }
  0x2a   :  { %v58_v27 = vld [vmem:[%s1440_s0 + $0x88] sm:$0xff]  ;;  %v66_v28 = vpack.c.bf16 %v56_v24, %v51_v23  ;;  %v1224_v49 = vld [vmem:[%s1443_s3 + $0x40] sm:$0xff]  }
  0x2b   :  { %513 = vmatpush1.bf16.msra.mxu0 %v1152_v30  ;;  %v68_v29 = vpack.c.bf16 %v58_v27, %v53_v26  ;;  %v1255_v30 = vmov 0   ;;  %v1222_v47 = vld [vmem:[%s1443_s3 + $0x48] sm:$0xff]  }
  0x2c   :  { %514 = vmatprep.subr.bf16.mxu0 %v1156_v31  ;;  %566 = vmatpush1.bf16.msra.mxu1 %v1155_v32  ;;  %v45_v31 = vld [vmem:[%s1440_s0 + $0x20] sm:$0xff]  ;;  %v50_v32 = vld [vmem:[%s1440_s0 + $0x48] sm:$0xff] }
  0x2d   :  { %567 = vmatprep.subr.bf16.mxu1 %v1159_v33  ;;  %v65_v33 = vpack.c.bf16 %v50_v32, %v45_v31 }
  0x2f   :  { %515 = vmatpush2.bf16.msra.mxu0 %v1158_v34  ;;  %v55_v34 = vld [vmem:[%s1440_s0 + $0x70] sm:$0xff] }
  0x30   :  { %516 = vmatprep.subr.bf16.mxu0 %v1162_v35  ;;  %568 = vmatpush2.bf16.msra.mxu1 %v1161_v36  ;;  %v60_v35 = vld [vmem:[%s1440_s0 + $0x98] sm:$0xff] }
  0x31   :  { %569 = vmatprep.subr.bf16.mxu1 %v1165_v37  ;;  %v70_v36 = vpack.c.bf16 %v60_v35, %v55_v34  ;;  %v1212_v37 = vld [vmem:[%s1443_s3 + $0x70] sm:$0xff]  }
  0x33   :  { %517 = vmatpush2.bf16.msra.mxu0 %v1164_v38  ;;  %v1213_v38 = vld [vmem:[%s1443_s3 + $0x30] sm:$0xff]  }
  0x34   :  { %518 = vmatprep.subr.bf16.mxu0 %v1168_v39  ;;  %570 = vmatpush2.bf16.msra.mxu1 %v1167_v40  ;;  %v1214_v39 = vld [vmem:[%s1443_s3 + $0x68] sm:$0xff]  }
  0x35   :  { %571 = vmatprep.subr.bf16.mxu1 %v1171_v41  ;;  %v1215_v40 = vld [vmem:[%s1443_s3 + $0x28] sm:$0xff]   ;;  %v1216_v41 = vld [vmem:[%s1443_s3 + $0x60] sm:$0xff]  }
  0x37   :  { %519 = vmatpush2.bf16.msra.mxu0 %v1170_v42  ;;  %v1217_v42 = vld [vmem:[%s1443_s3 + $0x20] sm:$0xff]  }
  0x38   :  { %520 = vmatprep.subr.bf16.mxu0 %v1174_v43  ;;  %572 = vmatpush2.bf16.msra.mxu1 %v1173_v44  ;;  %v1218_v43 = vld [vmem:[%s1443_s3 + $0x58] sm:$0xff]  }
  0x39   :  { %573 = vmatprep.subr.bf16.mxu1 %v1177_v45  ;;  %v1219_v44 = vld [vmem:[%s1443_s3 + $0x18] sm:$0xff]   ;;  %v1220_v45 = vld [vmem:[%s1443_s3 + $0x50] sm:$0xff]  }
  0x3b   :  { %521 = vmatpush2.bf16.msra.mxu0 %v1176_v48  ;;  %v1223_v48 = vld [vmem:[%s1443_s3 + $0x8] sm:$0xff]  }
  0x3c   :  { %522 = vmatprep.subr.bf16.mxu0 %v1180_v50  ;;  %574 = vmatpush2.bf16.msra.mxu1 %v1179_v51  ;;  %v1225_v50 = vld [vmem:[%s1443_s3] sm:$0xff]   ;;  %v141_v51 = vlaneseq }
  0x3d   :  { %575 = vmatprep.subr.bf16.mxu1 %v1183_v54 }
  0x3e   :  { %v142_v55 = vshrl.u32 %v141_v51, 7 }
  0x3f   :  { %523 = vmatpush2.bf16.msra.mxu0 %v1182_v56 }
  0x40   :  { %524 = vmatprep.subr.bf16.mxu0 %v1186_v57  ;;  %576 = vmatpush2.bf16.msra.mxu1 %v1185_v58 }
  0x41   :  { %577 = vmatprep.subr.bf16.mxu1 %v1189_v59 }
  0x43   :  { %525 = vmatpush2.bf16.msra.mxu0 %v1188_v60  ;;  %v147_v60 = vsub.s32 1, %v142_v55 }
  0x44   :  { %526 = vmatprep.subr.bf16.mxu0 %v1192_v62  ;;  %578 = vmatpush2.bf16.msra.mxu1 %v1191_v61  ;;  %v143_v61 = vsub.s32 0, %v142_v55  ;;  %v1227_v55 = vld [vmem:[%s1445_s5 + $0x10] sm:$0xff]  }
  0x45   :  { %579 = vmatprep.subr.bf16.mxu1 %v1195_v0 }
  0x47   :  { %527 = vmatpush2.bf16.msra.mxu0 %v1194_v63  ;;  %v139_v63 = vld [vmem:[%s1442_s2] sm:$0x3] }
  0x48   :  { %528 = vmatprep.subr.bf16.mxu0 %v1198_v1  ;;  %580 = vmatpush2.bf16.msra.mxu1 %v1197_v2  ;;  %v148_v2 = vrot.slane %v139_v63, %v147_v60 }
  0x49   :  { %581 = vmatprep.subr.bf16.mxu1 %v1201_v3  ;;  %v144_v3 = vrot.slane %v139_v63, %v143_v61  ;;  %v1034_v61 = vld [vmem:[%s1444_s4] ss:$0 sm:$0xff] }
  0x4b   :  { %529 = vmatpush2.bf16.msra.mxu0 %v1200_v4 }
  0x4c   :  { %616 = vmatprep.subr.bf16.mxu0 %v1206_v7  ;;  %582 = vmatpush2.bf16.msra.mxu1 %v1203_v10 }
  0x4d   :  { %1058 = vmatprep.subr.bf16.mxu1 %v1210_v15 }
  0x4e   :  { %531 = vmatmul.mubr.bf16.vlgmr.msra.gmra.mxu0 %v61_v17 }
  0x4f   :  { %617 = vmatpush1.bf16.msra.mxu0 %v1204_v16  ;;  %540 = vmatprep.mubr.bf16.mxu0 %v67_v19 }
  0x50   :  { %584 = vmatmul.mubr.bf16.vlgmr.msra.gmra.mxu1 %v63_v21  ;;  %618 = vmatprep.subr.bf16.mxu0 %v1209_v18 }
  0x51   :  { %593 = vmatprep.mubr.bf16.mxu1 %v69_v22  ;;  %1059 = vmatpush3.bf16.msra.mxu1 %v1211_v20 }
  0x52   :  { %1060 = vmatprep.subr.bf16.mxu1 %v1212_v37 }
  0x53   :  { %619 = vmatpush1.bf16.msra.mxu0 %v1207_v25 }
  0x55   :  { %1061 = vmatpush3.bf16.msra.mxu1 %v1213_v38 }
  0x56   :  { %541 = vmatmul.mubr.bf16.gmra.mxu0 %v66_v28  ;;  %1062 = vmatprep.subr.bf16.mxu1 %v1214_v39 }
  0x57   :  { %636 = vmatprep.mubr.bf16.mxu0 %v1255_v30 }
  0x58   :  { %594 = vmatmul.mubr.bf16.gmra.mxu1 %v68_v29 }
  0x59   :  { %1063 = vmatpush3.bf16.msra.mxu1 %v1215_v40 }
  0x5a   :  { %1064 = vmatprep.subr.bf16.mxu1 %v1216_v41 }
  0x5d   :  { %1065 = vmatpush3.bf16.msra.mxu1 %v1217_v42 }
  0x5e   :  { %1032 = vmatmul.mubr.msk.bf16.vlgmr.msra.gmra.mxu0 %vm491_vm0, %v65_v33  ;;  %1066 = vmatprep.subr.bf16.mxu1 %v1218_v43 }
  0x5f   :  { %646 = vmatprep.mubr.bf16.mxu0 %v1255_v30 }
  0x61   :  { %1067 = vmatpush3.bf16.msra.mxu1 %v1219_v44 }
  0x62   :  { %1068 = vmatprep.subr.bf16.mxu1 %v1220_v45 }
  0x65   :  { %1069 = vmatpush3.bf16.msra.mxu1 %v1221_v46 }
  0x66   :  { %1033 = vmatmul.mubr.msk.bf16.gmra.mxu0 %vm491_vm0, %v70_v36  ;;  %1070 = vmatprep.subr.bf16.mxu1 %v1222_v47 }
  0x69   :  { %1071 = vmatpush3.bf16.msra.mxu1 %v1223_v48 }
  0x6a   :  { %1072 = vmatprep.subr.bf16.mxu1 %v1224_v49 }
  0x6d   :  { %1073 = vmatpush3.bf16.msra.mxu1 %v1225_v50 }
 0x10e   :  { %v532_v52 = vpop.f32.mrf.mxu0 }
 0x10f   :  { %v533_v9 = vadd.f32 %v532_v52, %v144_v3 }
 0x110   :  { %v534_v53 = vpop.f32.mrf.mxu0  ;;  %v585_v54 = vpop.f32.mrf.mxu1 }
 0x111   :  { %v535_v7 = vadd.f32 %v534_v53, %v148_v2  ;;  %v586_v16 = vadd.f32 %v585_v54, %v533_v9  ;;  %v1226_v54 = vld [vmem:[%s1445_s5 + $0x18] sm:$0xff]  }
 0x112   :  { %v536_v56 = vpop.f32.mrf.mxu0  ;;  %v587_v57 = vpop.f32.mrf.mxu1  ;;  %1092 = vmatprep.subr.bf16.mxu0 %v1226_v54 }
 0x113   :  { %v537_v8 = vadd.f32 %v536_v56, %v144_v3  ;;  %v588_v14 = vadd.f32 %v587_v57, %v535_v7  ;;  %1093 = vmatpush3.bf16.msra.mxu0 %v1226_v54  ;;  %v1228_v56 = vld [vmem:[%s1445_s5 + $0x8] sm:$0xff]   ;;  %v1229_v57 = vld [vmem:[%s1445_s5] sm:$0xff]  }
 0x114   :  { %v538_v58 = vpop.f32.mrf.mxu0  ;;  %v589_v59 = vpop.f32.mrf.mxu1  ;;  %1094 = vmatprep.subr.bf16.mxu0 %v1227_v55 }
 0x115   :  { %v539_v11 = vadd.f32 %v538_v58, %v148_v2  ;;  %v590_v15 = vadd.f32 %v589_v59, %v537_v8 }
 0x116   :  { %v542_v62 = vpop.f32.mrf.mxu0  ;;  %v591_v0 = vpop.f32.mrf.mxu1 }
 0x117   :  { %v592_v18 = vadd.f32 %v591_v0, %v539_v11  ;;  %v543_v27 = vadd.f32 %v542_v62, %v144_v3  ;;  %1095 = vmatpush3.bf16.msra.mxu0 %v1227_v55 }
 0x118   :  { %v544_v1 = vpop.f32.mrf.mxu0  ;;  %v595_v5 = vpop.f32.mrf.mxu1  ;;  %1096 = vmatprep.subr.bf16.mxu0 %v1228_v56 }
 0x119   :  { %v545_v24 = vadd.f32 %v544_v1, %v148_v2  ;;  %v596_v39 = vadd.f32 %v595_v5, %v543_v27 }
 0x11a   :  { %v546_v4 = vpop.f32.mrf.mxu0  ;;  %v597_v12 = vpop.f32.mrf.mxu1 }
 0x11b   :  { %v547_v25 = vadd.f32 %v546_v4, %v144_v3  ;;  %v598_v36 = vadd.f32 %v597_v12, %v545_v24  ;;  %1097 = vmatpush3.bf16.msra.mxu0 %v1228_v56 }
 0x11c   :  { %v548_v6 = vpop.f32.mrf.mxu0  ;;  %v599_v21 = vpop.f32.mrf.mxu1  ;;  %1098 = vmatprep.subr.bf16.mxu0 %v1229_v57 }
 0x11d   :  { %v549_v30 = vadd.f32 %v548_v6, %v148_v2  ;;  %v600_v37 = vadd.f32 %v599_v21, %v547_v25 }
 0x11e   :  { %v638_v10 = vpop.f32.mrf.mxu0  ;;  %v601_v33 = vpop.f32.mrf.mxu1 }
 0x11f   :  { %v639_v22 = vadd.f32 %v638_v10, %v586_v16  ;;  %v602_v42 = vadd.f32 %v601_v33, %v549_v30  ;;  %1099 = vmatpush3.bf16.msra.mxu0 %v1229_v57 }
 0x120   :  { %v640_v13 = vpop.f32.mrf.mxu0 }
 0x121   :  { %v641_v19 = vadd.f32 %v640_v13, %v588_v14  ;;  %v657_v34 = vmax.f32 %v639_v22, 0.0 }
 0x122   :  { %v642_v17 = vpop.f32.mrf.mxu0 }
 0x123   :  { %v643_v20 = vadd.f32 %v642_v17, %v590_v15  ;;  %v658_v31 = vmax.f32 %v641_v19, 0.0  ;;  %v1051_v17 = vld [vmem:[%s1446_s6] ss:$0 sm:$0xff] }
 0x124   :  { %v644_v23 = vpop.f32.mrf.mxu0 }
 0x125   :  { %v645_v26 = vadd.f32 %v644_v23, %v592_v18  ;;  %v659_v28 = vmax.f32 %v643_v20, 0.0 }
 0x126   :  { %v648_v29 = vpop.f32.mrf.mxu0 }
 0x127   :  { %v660_v32 = vmax.f32 %v645_v26, 0.0  ;;  %v665_v40 = vpack.c.bf16 %v659_v28, %v657_v34  ;;  %v649_v45 = vadd.f32 %v648_v29, %v596_v39 }
 0x128   :  { %v650_v35 = vpop.f32.mrf.mxu0 }
 0x129   :  { %v666_v38 = vpack.c.bf16 %v660_v32, %v658_v31  ;;  %v651_v43 = vadd.f32 %v650_v35, %v598_v36  ;;  %v661_v51 = vmax.f32 %v649_v45, 0.0 }
 0x12a   :  { %v652_v41 = vpop.f32.mrf.mxu0 }
 0x12b   :  { %v653_v44 = vadd.f32 %v652_v41, %v600_v37  ;;  %836 = vmatprep.mubr.bf16.mxu1 %v666_v38  ;;  %v662_v49 = vmax.f32 %v651_v43, 0.0 }
 0x12c   :  { %v654_v46 = vpop.f32.mrf.mxu0  ;;  %837 = vmatmul.mubr.bf16.vlgmr.msra.gmra.mxu1 %v665_v40 }
 0x12d   :  { %v655_v47 = vadd.f32 %v654_v46, %v602_v42  ;;  %v663_v48 = vmax.f32 %v653_v44, 0.0 }
 0x12f   :  { %v664_v50 = vmax.f32 %v655_v47, 0.0  ;;  %v667_v53 = vpack.c.bf16 %v663_v48, %v661_v51 }
 0x131   :  { %v668_v52 = vpack.c.bf16 %v664_v50, %v662_v49 }
 0x133   :  { %844 = vmatprep.mubr.bf16.mxu1 %v668_v52 }
 0x134   :  { %845 = vmatmul.mubr.bf16.gmra.mxu1 %v667_v53 }
 0x1ec   :  { %v1074_v58 = vpop.f32.mrf.mxu1 }
 0x1ee   :  { %v1075_v59 = vpop.f32.mrf.mxu1 }
 0x1ef   :  { %v1076_v60 = vadd.f32 %v1075_v59, %v1074_v58 }
 0x1f0   :  { %v1077_v62 = vpop.f32.mrf.mxu1 }
 0x1f1   :  { %v839_v0 = vadd.f32 %v1076_v60, %v1034_v61 }
 0x1f2   :  { %v1078_v63 = vpop.f32.mrf.mxu1 }
 0x1f3   :  { %v1079_v1 = vadd.f32 %v1078_v63, %v1077_v62  ;;  %v853_v5 = vmax.f32 %v839_v0, 0.0 }
 0x1f4   :  { %v1080_v2 = vpop.f32.mrf.mxu1 }
 0x1f5   :  { %v842_v3 = vadd.f32 %v1079_v1, %v1034_v61 }
 0x1f6   :  { %v1081_v4 = vpop.f32.mrf.mxu1 }
 0x1f7   :  { %v854_v6 = vmax.f32 %v842_v3, 0.0  ;;  %v1082_v7 = vadd.f32 %v1081_v4, %v1080_v2 }
 0x1f8   :  { %v1083_v8 = vpop.f32.mrf.mxu1 }
 0x1f9   :  { %v857_v9 = vpack.c.bf16 %v854_v6, %v853_v5  ;;  %v847_v11 = vadd.f32 %v1082_v7, %v1034_v61 }
 0x1fa   :  { %v1084_v10 = vpop.f32.mrf.mxu1 }
 0x1fb   :  { %v1085_v12 = vadd.f32 %v1084_v10, %v1083_v8  ;;  %1100 = vmatprep.mubr.msk.bf16.mxu0 %vm898_vm1, %v857_v9  ;;  %v855_v14 = vmax.f32 %v847_v11, 0.0 }
 0x1fd   :  { %v850_v13 = vadd.f32 %v1085_v12, %v1034_v61 }
 0x1ff   :  { %v856_v15 = vmax.f32 %v850_v13, 0.0 }
 0x201   :  { %v858_v16 = vpack.c.bf16 %v856_v15, %v855_v14 }
 0x203   :  { %1101 = vmatmul.mubr.msk.bf16.vlgmr.msra.gmra.mxu0 %vm898_vm1, %v858_v16 }
 0x2c3   :  { %v1102_v18 = vpop.f32.mrf.mxu0 }
 0x2c4   :  { %v948_v19 = vadd.f32 %v1102_v18, %v1051_v17 }
 0x2c5   :  { %v939_v20 = vpop.f32.mrf.mxu0 }
 0x2c6   :  { %957 = vst.msk [vmem:[%s1447_s7 + $0x10] sm:$0xff] %vm954_vm2, %v948_v19  ;;  %v940_v21 = vadd.f32 %v1051_v17, %v939_v20 }
 0x2c7   :  { %v1103_v22 = vpop.f32.mrf.mxu0 }
 0x2c8   :  { %955 = vst.msk [vmem:[%s1447_s7] sm:$0xff] %vm954_vm2, %v940_v21  ;;  %v951_v23 = vadd.f32 %v1103_v22, %v1051_v17 }
 0x2c9   :  { %v942_v24 = vpop.f32.mrf.mxu0 }
 0x2ca   :  { %958 = vst.msk [vmem:[%s1447_s7 + $0x18] sm:$0xff] %vm954_vm2, %v951_v23  ;;  %v943_v25 = vadd.f32 %v1051_v17, %v942_v24 }
 0x2cc   :  { %956 = vst.msk [vmem:[%s1447_s7 + $0x8] sm:$0xff] %vm954_vm2, %v943_v25 }
 0x2cd   :  { %963 = vsyncpa [#allocation3], 1 }

</bundles_post_ra>
